<compile_context>
chip_gen: v5e
topology: v5e:2x2
jax: 0.10.0
libtpu: 0.0.40
codegen_flags: <defaults>
</compile_context>

<pallas_src>
import jax
import jax.numpy as jnp
from jax.experimental import pallas as pl
from jax.experimental.pallas import tpu as pltpu

CNN_OUTPUT = 64


def _critic_kernel(s_ref, a_ref,
                   ws_ref, wa_ref, b1_ref,
                   w2_ref, b2_ref,
                   w3_ref, b3_ref,
                   q_ref):
    """Fused twin-Q forward for one batch tile. q_ref is [TILE_B, 2]."""
    s = s_ref[...]
    a = a_ref[...]

    # layer 1 (both branches): the torch.cat([s, a], 1) is folded into two
    # matmuls against the row-split fused weight -> no concat ever built.
    h = (jnp.dot(s, ws_ref[...], preferred_element_type=jnp.float32)
         + jnp.dot(a, wa_ref[...], preferred_element_type=jnp.float32)
         + b1_ref[...])
    h = jnp.maximum(h, 0.0)

    # layer 2 (both branches): block-diagonal [2H, 2H]
    h = jnp.dot(h, w2_ref[...], preferred_element_type=jnp.float32) + b2_ref[...]
    h = jnp.maximum(h, 0.0)

    # heads: [2H, 2] -> [TILE_B, 2] (q1 in col 0, q2 in col 1)
    q = jnp.dot(h, w3_ref[...], preferred_element_type=jnp.float32) + b3_ref[...]
    q_ref[...] = q.astype(q_ref.dtype)


def _pack_params(params):
    """Pack the 6 per-branch linear layers into fused matrices.

    Every weight is stored [in_features, out_features] (x @ W + b).
    """
    (w1, b1, w2, b2, w3, b3, w4, b4, w5, b5, w6, b6) = params
    hidden = w1.shape[1]

    # layer 1: [d_in, 2H], then split at the 64-wide state boundary
    w14 = jnp.concatenate([w1, w4], axis=1)
    ws14 = w14[:CNN_OUTPUT, :]            # [64, 2H]
    wa14 = w14[CNN_OUTPUT:, :]            # [action_dim, 2H]
    b14 = jnp.concatenate([b1, b4], axis=1)

    # layer 2: block-diagonal [2H, 2H] (off-diagonal zeros keep branches independent)
    z = jnp.zeros((hidden, hidden), w2.dtype)
    w25 = jnp.concatenate([jnp.concatenate([w2, z], axis=1),
                           jnp.concatenate([z, w5], axis=1)], axis=0)
    b25 = jnp.concatenate([b2, b5], axis=1)

    # heads: block-diagonal [2H, 2]
    z1 = jnp.zeros((hidden, 1), w3.dtype)
    w36 = jnp.concatenate([jnp.concatenate([w3, z1], axis=1),
                           jnp.concatenate([z1, w6], axis=1)], axis=0)
    b36 = jnp.concatenate([b3, b6], axis=1)

    return ws14, wa14, b14, w25, b25, w36, b36


def _round_up(x, m):
    return (x + m - 1) // m * m


def critic_forward(s, a, params, *, max_tile_b=2048):
    """s: any shape reshapable to [B, 64]; a: [B, action_dim]. Returns (q1, q2)."""
    s = s.reshape(-1, CNN_OUTPUT).astype(jnp.float32)
    a = a.astype(jnp.float32)
    B = s.shape[0]
    action_dim = a.shape[1]

    ws14, wa14, b14, w25, b25, w36, b36 = _pack_params(params)
    h2 = b14.shape[1]  # 2 * hidden_width

    # batch tile: multiple of 8 sublanes; large tiles amortize the ~0.35 us
    # per-grid-step overhead while staying far below the VMEM budget.
    tile_b = min(_round_up(max_tile_b, 8), _round_up(B, 8))
    b_pad = _round_up(B, tile_b)
    if b_pad != B:
        s = jnp.pad(s, ((0, b_pad - B), (0, 0)))
        a = jnp.pad(a, ((0, b_pad - B), (0, 0)))

    grid = (b_pad // tile_b,)

    def batch_spec(width):
        return pl.BlockSpec((tile_b, width), lambda i: (i, 0))

    def resident(arr):
        return pl.BlockSpec(arr.shape, lambda i: (0, 0))

    # advisory cost estimate for XLA's scheduler
    flops = 2 * b_pad * (CNN_OUTPUT * h2 + action_dim * h2 + h2 * h2 + h2 * 2)
    weight_elems = (ws14.size + wa14.size + b14.size + w25.size + b25.size
                    + w36.size + b36.size)
    bytes_accessed = 4 * (b_pad * (CNN_OUTPUT + action_dim + 2) + weight_elems)

    # scoped-VMEM limit: ~2x the double-buffered per-tile working set + weights
    tile_bytes = 4 * tile_b * (CNN_OUTPUT + action_dim + h2 + 2)
    vmem_limit = int(min(64 * 1024 * 1024,
                         max(4 * 1024 * 1024, 4 * tile_bytes + 2 * 4 * weight_elems)))

    q = pl.pallas_call(
        _critic_kernel,
        out_shape=jax.ShapeDtypeStruct((b_pad, 2), jnp.float32),
        grid=grid,
        in_specs=[
            batch_spec(CNN_OUTPUT),   # s tile
            batch_spec(action_dim),   # a tile
            resident(ws14),           # [64, 2H]
            resident(wa14),           # [action_dim, 2H]
            resident(b14),            # [1, 2H]
            resident(w25),            # [2H, 2H] block-diag
            resident(b25),            # [1, 2H]
            resident(w36),            # [2H, 2] heads
            resident(b36),            # [1, 2]
        ],
        out_specs=pl.BlockSpec((tile_b, 2), lambda i: (i, 0)),
        compiler_params=pltpu.CompilerParams(
            dimension_semantics=("parallel",),
            vmem_limit_bytes=vmem_limit),
        cost_estimate=pl.CostEstimate(
            flops=int(flops), transcendentals=0,
            bytes_accessed=int(bytes_accessed)),
    )(s, a, ws14, wa14, b14, w25, b25, w36, b36)

    q = q[:B]
    return q[:, 0:1], q[:, 1:2]


def init_params(key, action_dim, hidden_width):
    """PyTorch-style uniform fan-in init; weights [in, out], biases [1, out]."""
    d_in = CNN_OUTPUT + action_dim
    dims = [
        (d_in, hidden_width),          # l1
        (hidden_width, hidden_width),  # l2
        (hidden_width, 1),             # l3
        (d_in, hidden_width),          # l4
        (hidden_width, hidden_width),  # l5
        (hidden_width, 1),             # l6
    ]
    params = []
    for (fan_in, fan_out) in dims:
        key, kw, kb = jax.random.split(key, 3)
        bound = 1.0 / jnp.sqrt(jnp.float32(fan_in))
        w = jax.random.uniform(kw, (fan_in, fan_out), jnp.float32, -bound, bound)
        b = jax.random.uniform(kb, (1, fan_out), jnp.float32, -bound, bound)
        params.extend([w, b])
    return tuple(params)


def critic_reference(s, a, params):
    """Pure-JAX reference of the PyTorch forward (un-fused)."""
    s = s.reshape(-1, CNN_OUTPUT)
    sa = jnp.concatenate([s, a], axis=1)
    (w1, b1, w2, b2, w3, b3, w4, b4, w5, b5, w6, b6) = params
    h = jax.nn.relu(sa @ w1 + b1)
    h = jax.nn.relu(h @ w2 + b2)
    q1 = h @ w3 + b3
    g = jax.nn.relu(sa @ w4 + b4)
    g = jax.nn.relu(g @ w5 + b5)
    q2 = g @ w6 + b6
    return q1, q2


if __name__ == "__main__":
    key = jax.random.PRNGKey(0)
    key, ks, ka, kp = jax.random.split(key, 4)

    batch = 8
    action_dim = 3
    hidden_width = 32

    # s arrives as CNN features; any shape flattening to [B, 64] is allowed.
    s = jax.random.normal(ks, (batch, CNN_OUTPUT), jnp.float32)
    a = jax.random.normal(ka, (batch, action_dim), jnp.float32)

    params = init_params(kp, action_dim, hidden_width)

    q1, q2 = critic_forward(s, a, params)
    q1 = jax.block_until_ready(q1)
    q2 = jax.block_until_ready(q2)

    r1, r2 = critic_reference(s, a, params)
    assert q1.shape == (batch, 1) and q2.shape == (batch, 1)
    assert jnp.allclose(q1, r1, atol=1e-5, rtol=1e-5)
    assert jnp.allclose(q2, r2, atol=1e-5, rtol=1e-5)

    print("KERNEL_OK")
</pallas_src>

<mosaic_0001>
module attributes {stable_mosaic.version = 11 : i64} {
  func.func @_critic_kernel(%arg0: i32, %arg1: memref<8x64xf32, #tpu.memory_space<vmem>>, %arg2: memref<8x3xf32, #tpu.memory_space<vmem>>, %arg3: memref<64x64xf32, #tpu.memory_space<vmem>>, %arg4: memref<3x64xf32, #tpu.memory_space<vmem>>, %arg5: memref<1x64xf32, #tpu.memory_space<vmem>>, %arg6: memref<64x64xf32, #tpu.memory_space<vmem>>, %arg7: memref<1x64xf32, #tpu.memory_space<vmem>>, %arg8: memref<64x2xf32, #tpu.memory_space<vmem>>, %arg9: memref<1x2xf32, #tpu.memory_space<vmem>>, %arg10: memref<8x2xf32, #tpu.memory_space<vmem>>) attributes {dimension_semantics = [#tpu.dimension_semantics<parallel>], iteration_bounds = array<i64: 1>, scalar_prefetch = 0 : i64, scratch_operands = 0 : i64, tpu.core_type = #tpu.core_type<tc>, window_params = [{transform_indices = @transform_0, window_bounds = array<i64: 8, 64>}, {transform_indices = @transform_1, window_bounds = array<i64: 8, 3>}, {pipeline_mode = #tpu.pipeline_mode<synchronous>, transform_indices = @transform_2, window_bounds = array<i64: 64, 64>}, {pipeline_mode = #tpu.pipeline_mode<synchronous>, transform_indices = @transform_3, window_bounds = array<i64: 3, 64>}, {pipeline_mode = #tpu.pipeline_mode<synchronous>, transform_indices = @transform_4, window_bounds = array<i64: 1, 64>}, {pipeline_mode = #tpu.pipeline_mode<synchronous>, transform_indices = @transform_5, window_bounds = array<i64: 64, 64>}, {pipeline_mode = #tpu.pipeline_mode<synchronous>, transform_indices = @transform_6, window_bounds = array<i64: 1, 64>}, {pipeline_mode = #tpu.pipeline_mode<synchronous>, transform_indices = @transform_7, window_bounds = array<i64: 64, 2>}, {pipeline_mode = #tpu.pipeline_mode<synchronous>, transform_indices = @transform_8, window_bounds = array<i64: 1, 2>}, {transform_indices = @transform_9, window_bounds = array<i64: 8, 2>}]} {
    %c0 = arith.constant 0 : index
    %c0_0 = arith.constant 0 : index
    %0 = vector.load %arg1[%c0, %c0_0] : memref<8x64xf32, #tpu.memory_space<vmem>>, vector<8x64xf32>
    %c0_1 = arith.constant 0 : index
    %c0_2 = arith.constant 0 : index
    %1 = vector.load %arg2[%c0_1, %c0_2] : memref<8x3xf32, #tpu.memory_space<vmem>>, vector<8x3xf32>
    %c0_3 = arith.constant 0 : index
    %c0_4 = arith.constant 0 : index
    %2 = vector.load %arg3[%c0_3, %c0_4] : memref<64x64xf32, #tpu.memory_space<vmem>>, vector<64x64xf32>
    %cst = arith.constant dense<0.000000e+00> : vector<8x64xf32>
    %3 = tpu.matmul %0, %2, %cst {dimension_numbers = #tpu.dot_dimension_numbers<[1], [0], [0], [1], [0, 0, 1, 1], [], []>} : vector<8x64xf32>, vector<64x64xf32>, vector<8x64xf32> -> vector<8x64xf32>
    %c0_5 = arith.constant 0 : index
    %c0_6 = arith.constant 0 : index
    %4 = vector.load %arg4[%c0_5, %c0_6] : memref<3x64xf32, #tpu.memory_space<vmem>>, vector<3x64xf32>
    %cst_7 = arith.constant dense<0.000000e+00> : vector<8x64xf32>
    %5 = tpu.matmul %1, %4, %cst_7 {dimension_numbers = #tpu.dot_dimension_numbers<[1], [0], [0], [1], [0, 0, 1, 1], [], []>} : vector<8x3xf32>, vector<3x64xf32>, vector<8x64xf32> -> vector<8x64xf32>
    %6 = arith.addf %3, %5 : vector<8x64xf32>
    %c0_8 = arith.constant 0 : index
    %c0_9 = arith.constant 0 : index
    %7 = vector.load %arg5[%c0_8, %c0_9] : memref<1x64xf32, #tpu.memory_space<vmem>>, vector<1x64xf32>
    %8 = vector.broadcast %7 : vector<1x64xf32> to vector<8x64xf32>
    %9 = arith.addf %6, %8 : vector<8x64xf32>
    %cst_10 = arith.constant 0.000000e+00 : f32
    %10 = vector.broadcast %cst_10 : f32 to vector<8x64xf32>
    %11 = arith.maximumf %9, %10 : vector<8x64xf32>
    %c0_11 = arith.constant 0 : index
    %c0_12 = arith.constant 0 : index
    %12 = vector.load %arg6[%c0_11, %c0_12] : memref<64x64xf32, #tpu.memory_space<vmem>>, vector<64x64xf32>
    %cst_13 = arith.constant dense<0.000000e+00> : vector<8x64xf32>
    %13 = tpu.matmul %11, %12, %cst_13 {dimension_numbers = #tpu.dot_dimension_numbers<[1], [0], [0], [1], [0, 0, 1, 1], [], []>} : vector<8x64xf32>, vector<64x64xf32>, vector<8x64xf32> -> vector<8x64xf32>
    %c0_14 = arith.constant 0 : index
    %c0_15 = arith.constant 0 : index
    %14 = vector.load %arg7[%c0_14, %c0_15] : memref<1x64xf32, #tpu.memory_space<vmem>>, vector<1x64xf32>
    %15 = vector.broadcast %14 : vector<1x64xf32> to vector<8x64xf32>
    %16 = arith.addf %13, %15 : vector<8x64xf32>
    %cst_16 = arith.constant 0.000000e+00 : f32
    %17 = vector.broadcast %cst_16 : f32 to vector<8x64xf32>
    %18 = arith.maximumf %16, %17 : vector<8x64xf32>
    %c0_17 = arith.constant 0 : index
    %c0_18 = arith.constant 0 : index
    %19 = vector.load %arg8[%c0_17, %c0_18] : memref<64x2xf32, #tpu.memory_space<vmem>>, vector<64x2xf32>
    %cst_19 = arith.constant dense<0.000000e+00> : vector<8x2xf32>
    %20 = tpu.matmul %18, %19, %cst_19 {dimension_numbers = #tpu.dot_dimension_numbers<[1], [0], [0], [1], [0, 0, 1, 1], [], []>} : vector<8x64xf32>, vector<64x2xf32>, vector<8x2xf32> -> vector<8x2xf32>
    %c0_20 = arith.constant 0 : index
    %c0_21 = arith.constant 0 : index
    %21 = vector.load %arg9[%c0_20, %c0_21] : memref<1x2xf32, #tpu.memory_space<vmem>>, vector<1x2xf32>
    %22 = vector.broadcast %21 : vector<1x2xf32> to vector<8x2xf32>
    %23 = arith.addf %20, %22 : vector<8x2xf32>
    %c0_22 = arith.constant 0 : index
    %c0_23 = arith.constant 0 : index
    %24 = vector.load %arg10[%c0_22, %c0_23] : memref<8x2xf32, #tpu.memory_space<vmem>>, vector<8x2xf32>
    tpu.vector_store %arg10[%c0_22, %c0_23], %23 {strides = array<i32>} : memref<8x2xf32, #tpu.memory_space<vmem>>, vector<8x2xf32>,
    return
  }
  func.func @transform_0(%arg0: i32) -> (i32, i32) {
    %c0_i32 = arith.constant 0 : i32
    %c0_i32_0 = arith.constant 0 : i32
    return %arg0, %c0_i32 : i32, i32
  }
  func.func @transform_1(%arg0: i32) -> (i32, i32) {
    %c0_i32 = arith.constant 0 : i32
    %c0_i32_0 = arith.constant 0 : i32
    return %arg0, %c0_i32 : i32, i32
  }
  func.func @transform_2(%arg0: i32) -> (i32, i32) {
    %c0_i32 = arith.constant 0 : i32
    %c0_i32_0 = arith.constant 0 : i32
    %c0_i32_1 = arith.constant 0 : i32
    return %c0_i32, %c0_i32_0 : i32, i32
  }
  func.func @transform_3(%arg0: i32) -> (i32, i32) {
    %c0_i32 = arith.constant 0 : i32
    %c0_i32_0 = arith.constant 0 : i32
    %c0_i32_1 = arith.constant 0 : i32
    return %c0_i32, %c0_i32_0 : i32, i32
  }
  func.func @transform_4(%arg0: i32) -> (i32, i32) {
    %c0_i32 = arith.constant 0 : i32
    %c0_i32_0 = arith.constant 0 : i32
    %c0_i32_1 = arith.constant 0 : i32
    return %c0_i32, %c0_i32_0 : i32, i32
  }
  func.func @transform_5(%arg0: i32) -> (i32, i32) {
    %c0_i32 = arith.constant 0 : i32
    %c0_i32_0 = arith.constant 0 : i32
    %c0_i32_1 = arith.constant 0 : i32
    return %c0_i32, %c0_i32_0 : i32, i32
  }
  func.func @transform_6(%arg0: i32) -> (i32, i32) {
    %c0_i32 = arith.constant 0 : i32
    %c0_i32_0 = arith.constant 0 : i32
    %c0_i32_1 = arith.constant 0 : i32
    return %c0_i32, %c0_i32_0 : i32, i32
  }
  func.func @transform_7(%arg0: i32) -> (i32, i32) {
    %c0_i32 = arith.constant 0 : i32
    %c0_i32_0 = arith.constant 0 : i32
    %c0_i32_1 = arith.constant 0 : i32
    return %c0_i32, %c0_i32_0 : i32, i32
  }
  func.func @transform_8(%arg0: i32) -> (i32, i32) {
    %c0_i32 = arith.constant 0 : i32
    %c0_i32_0 = arith.constant 0 : i32
    %c0_i32_1 = arith.constant 0 : i32
    return %c0_i32, %c0_i32_0 : i32, i32
  }
  func.func @transform_9(%arg0: i32) -> (i32, i32) {
    %c0_i32 = arith.constant 0 : i32
    %c0_i32_0 = arith.constant 0 : i32
    return %arg0, %c0_i32 : i32, i32
  }
}

</mosaic_0001>

<bundles_post_ra>
// kernel: tpu_custom_call.1
= control target key start
LH: loop header
LB: loop body
LE: loop exit
PB: predicated region body
PF: predicated region fallthrough
CT: control target
= control target key end

     0   :  { %14 = vsyncpa [#allocation3], 0  ;;  %s232_s12 = smov [#allocation2]   ;;  %s233_s14 = smov 128   ;;  %s360_s0 = inlined_call_operand.vmem [shape: f32[8,64], index: 0, kind: input, shape index: {}]   ;;  %s361_s1 = inlined_call_operand.vmem [shape: f32[8,3], index: 1, kind: input, shape index: {}]   ;;  %s362_s2 = inlined_call_operand.vmem [shape: f32[64,64], index: 2, kind: input, shape index: {}]   ;;  %s363_s3 = inlined_call_operand.vmem [shape: f32[3,64], index: 3, kind: input, shape index: {}]   ;;  %s364_s4 = inlined_call_operand.vmem [shape: f32[1,64], index: 4, kind: input, shape index: {}]   ;;  %s365_s5 = inlined_call_operand.hbm [shape: f32[64,64], index: 5, kind: input, shape index: {}]   ;;  %s366_s6 = inlined_call_operand.vmem [shape: f32[1,64], index: 6, kind: input, shape index: {}]   ;;  %s367_s7 = inlined_call_operand.vmem [shape: f32[64,2], index: 7, kind: input, shape index: {}]   ;;  %s368_s8 = inlined_call_operand.vmem [shape: f32[1,2], index: 8, kind: input, shape index: {}]   ;;  %s369_s9 = inlined_call_operand.vmem [shape: f32[8,2], index: 9, kind: output, shape index: {}]  }
   0x1   :  { %s29_s11 = sshll.u32 %s365_s5, 4  ;;  %s31_s13 = sshll.u32 %s232_s12, 4  ;;  %s30_s11 = int_to_ptr.hbm [resolvable:$true] %s29_s11  ;;  %s32_s13 = int_to_ptr.vmem [resolvable:$true] %s31_s13 }
   0x2   :  { %s234_s15 = smov 8  }
   0x3   :  { %37 = dma.hbm_to_vmem [thread:$0]  %s30_s11, 1024, %s32_s13, [#allocation3], %s233_s14, %s233_s14, %s234_s15  }
   0x4   :  { %230 = dma.done.wait [#allocation3], 1024  }
   0x5   :  { %231 = vsyncadd [#allocation3], 4294966272  ;;  %v57_v0 = vld [vmem:[%s362_s2 + $0x38] sm:$0xff]  ;;  %v56_v1 = vld [vmem:[%s362_s2 + $0x30] sm:$0xff]  ;;  %vm63_vm0 = vcmask 1042432   ;;  %vm59_vm1 = vcmask 23552  }
   0x6   :  { %99 = vmatpush.msra.mxu1 %v57_v0  ;;  %v55_v2 = vld [vmem:[%s362_s2 + $0x28] sm:$0xff]  ;;  %v58_v3 = vld [vmem:[%s363_s3] sm:$0x7]  ;;  %v124_v5 = vld [vmem:[#allocation2 + $0x38] sm:$0xff]  ;;  %vm87_vm2 = vcmask 523264   ;;  %vm188_vm3 = vcmask 15360  }
   0x7   :  { %195 = vmatpush.msk.msra.mxu0 %vm63_vm0, %v58_v3  ;;  %v49_v4 = vld [vmem:[%s361_s1] sm:$0xff]  ;;  %140 = vmatpush.msra.mxu2 %v124_v5  ;;  %v123_v7 = vld [vmem:[#allocation2 + $0x30] sm:$0xff]  ;;  %v122_v8 = vld [vmem:[#allocation2 + $0x28] sm:$0xff] }
   0x8   :  { %100 = vmatpush.msra.mxu1 %v56_v1  ;;  %v54_v6 = vld [vmem:[%s362_s2 + $0x20] sm:$0xff]  ;;  %196 = vmatmul.msk.f32.vlgmr.msra.gmra.mxu0 %vm59_vm1, %v49_v4  ;;  %v53_v9 = vld [vmem:[%s362_s2 + $0x18] sm:$0xff]  ;;  %v52_v11 = vld [vmem:[%s362_s2 + $0x10] sm:$0xff] }
   0x9   :  { %141 = vmatpush.msra.mxu2 %v123_v7  ;;  %v121_v10 = vld [vmem:[#allocation2 + $0x20] sm:$0xff]  ;;  %v51_v12 = vld [vmem:[%s362_s2 + $0x8] sm:$0xff]  ;;  %v120_v15 = vld [vmem:[#allocation2 + $0x18] sm:$0xff] }
   0xa   :  { %101 = vmatpush.msra.mxu1 %v55_v2  ;;  %v50_v13 = vld [vmem:[%s362_s2] sm:$0xff]  ;;  %v119_v16 = vld [vmem:[#allocation2 + $0x10] sm:$0xff]  ;;  %v118_v17 = vld [vmem:[#allocation2 + $0x8] sm:$0xff] }
   0xb   :  { %142 = vmatpush.msra.mxu2 %v122_v8  ;;  %v48_v14 = vld [vmem:[%s360_s0] sm:$0xff]  ;;  %v160_v19 = vld [vmem:[%s367_s7 + $0x38] sm:$0xff]  ;;  %v159_v20 = vld [vmem:[%s367_s7 + $0x30] sm:$0xff] }
   0xc   :  { %102 = vmatpush.msra.mxu1 %v54_v6  ;;  %v117_v18 = vld [vmem:[#allocation2] sm:$0xff]  ;;  %176 = vmatpush.msra.mxu3 %v160_v19  ;;  %v158_v21 = vld [vmem:[%s367_s7 + $0x28] sm:$0xff]  ;;  %v156_v23 = vld [vmem:[%s367_s7 + $0x18] sm:$0xff] }
   0xd   :  { %143 = vmatpush.msra.mxu2 %v121_v10  ;;  %v157_v22 = vld [vmem:[%s367_s7 + $0x20] sm:$0xff]  ;;  %v155_v30 = vld [vmem:[%s367_s7 + $0x10] sm:$0xff]  ;;  %v154_v31 = vld [vmem:[%s367_s7 + $0x8] sm:$0xff] }
   0xe   :  { %103 = vmatpush.msra.mxu1 %v53_v9  ;;  %177 = vmatpush.msra.mxu3 %v159_v20  ;;  %v203_v25 = vld [vmem:[%s364_s4] ss:$0 sm:$0xff] }
   0xf   :  { %144 = vmatpush.msra.mxu2 %v120_v15  ;;  %v153_v32 = vld [vmem:[%s367_s7] sm:$0xff] }
  0x10   :  { %104 = vmatpush.msra.mxu1 %v52_v11  ;;  %178 = vmatpush.msra.mxu3 %v158_v21  ;;  %v204_v33 = vld [vmem:[%s366_s6] ss:$0 sm:$0xff] }
  0x11   :  { %145 = vmatpush.msra.mxu2 %v119_v16  ;;  %v205_v37 = vld [vmem:[%s368_s8] ss:$0 sm:$0xff] }
  0x12   :  { %105 = vmatpush.msra.mxu1 %v51_v12  ;;  %179 = vmatpush.msra.mxu3 %v157_v22 }
  0x13   :  { %146 = vmatpush.msra.mxu2 %v118_v17 }
  0x14   :  { %106 = vmatpush.msra.mxu1 %v50_v13  ;;  %180 = vmatpush.msra.mxu3 %v156_v23 }
  0x15   :  { %197 = vmatmul.msk.f32.vlgmr.msra.gmra.mxu1 %vm87_vm2, %v48_v14  ;;  %147 = vmatpush.msra.mxu2 %v117_v18 }
  0x16   :  { %181 = vmatpush.msra.mxu3 %v155_v30 }
  0x18   :  { %182 = vmatpush.msra.mxu3 %v154_v31 }
  0x1a   :  { %183 = vmatpush.msra.mxu3 %v153_v32 }
  0x85   :  { %v84_v24 = vpop.f32.mrf.mxu0 }
  0x92   :  { %v108_v26 = vpop.f32.mrf.mxu1 }
  0x93   :  { %v109_v27 = vadd.f32 %v108_v26, %v84_v24 }
  0x95   :  { %v115_v28 = vadd.f32 %v203_v25, %v109_v27 }
  0x97   :  { %v116_v29 = vmax.f32 %v115_v28, 0.0 }
  0x99   :  { %198 = vmatmul.msk.f32.vlgmr.msra.gmra.mxu2 %vm87_vm2, %v116_v29 }
 0x11c   :  { %v149_v34 = vpop.f32.mrf.mxu2 }
 0x11d   :  { %v150_v35 = vadd.f32 %v204_v33, %v149_v34 }
 0x11f   :  { %v152_v36 = vmax.f32 %v150_v35, 0.0 }
 0x121   :  { %199 = vmatmul.msk.f32.vlgmr.msra.gmra.mxu3 %vm87_vm2, %v152_v36 }
 0x1a4   :  { %v185_v38 = vpop.f32.mrf.mxu3 }
 0x1a5   :  { %v186_v39 = vadd.f32 %v205_v37, %v185_v38 }
 0x1a7   :  { %189 = vst.msk [vmem:[%s369_s9] sm:$0xff] %vm188_vm3, %v186_v39 }
 0x1a8   :  { %194 = vsyncpa [#allocation3], 1 }

</bundles_post_ra>
